<compile_context>
chip_gen: v6e
topology: v6e:2x2x1
jax: 0.10.0
libtpu: 0.0.40
codegen_flags: <defaults>
</compile_context>

<pallas_src>
import functools

import numpy as np

import jax
import jax.numpy as jnp
from jax import lax
from jax.experimental import pallas as pl
from jax.experimental.pallas import tpu as pltpu


def _upsample_kernel(x_ref, halo_ref, w_ref, b_ref, a_ref, o_ref, *, TH, W, Cin, r):
    # x_ref    : (1, TH, Wp, Cin)     bf16  padded input rows [h*TH, h*TH+TH)
    # halo_ref : (1, 1, 2, Wp, Cin)   bf16  padded input rows [h*TH+TH, h*TH+TH+2)
    # w_ref    : (3, 3*Cin, Cout)     bf16  per-dy slab, rows (dx, cin), cols (i, j, c)
    # b_ref    : (1, Cout)            f32   bias, cols (i, j, c)
    # a_ref    : (1,)                 f32   PReLU alpha (SMEM scalar)
    # o_ref    : (1, TH, r, W, r*Cin) bf16  fused pixel-shuffle output layout
    rows = jnp.concatenate([x_ref[0], halo_ref[0, 0]], axis=0)          # (TH+2, Wp, Cin)

    # dy fold in-kernel: 3 accumulated MXU matmuls, K = 3*Cin each, f32 accumulation.
    acc = None
    for dy in range(3):
        win = rows[dy:dy + TH]                                          # (TH, Wp, Cin)
        lhs = jnp.concatenate([win[:, dx:dx + W, :] for dx in range(3)], axis=-1)
        part = jnp.dot(lhs.reshape(TH * W, 3 * Cin), w_ref[dy],
                       preferred_element_type=jnp.float32)              # (TH*W, Cout)
        acc = part if acc is None else acc + part

    y = acc + b_ref[...]                                                # bias
    alpha = a_ref[0]                                                    # scalar from SMEM
    y = jnp.where(y >= 0.0, y, alpha * y)      # PReLU; pre-shuffle valid (scalar alpha)

    # Fused PixelShuffle: columns are (i, j, c)-ordered, so each row phase i is a
    # contiguous column group.  Stores are lane-dense when r*Cin % 128 == 0
    # (production Cin=64, r=2 -> exactly 128 lanes); other configs use masked stores.
    rC = r * Cin
    for i in range(r):
        o_ref[0, :, i, :, :] = (
            y[:, i * rC:(i + 1) * rC].reshape(TH, W, rC).astype(o_ref.dtype))


def _vmem_budget_and_limit():
    """Per-generation VMEM numbers (v5e/v6e 128 MiB, v7x 64 MiB per TensorCore)."""
    cap = 64 * 1024 * 1024
    try:
        info = pltpu.get_tpu_info()
        cap = int(getattr(info, "vmem_capacity_bytes", cap) or cap)
    except Exception:
        pass
    limit = max(min(int(cap * 0.85), cap - 8 * 1024 * 1024), 16 * 1024 * 1024)
    budget = min(int(cap * 0.60), int(limit * 0.80))
    return budget, limit


def _step_vmem_bytes(TH, W, Cin, Cout):
    """Per-grid-step working set: double-buffered pipeline I/O + real intermediates."""
    Wp = W + 2
    in_t = TH * Wp * Cin * 2             # bf16 input row tile
    halo_t = 2 * Wp * Cin * 2            # bf16 halo tile
    w_t = 9 * Cin * Cout * 2             # bf16 weights (resident)
    b_t = Cout * 4                       # f32 bias
    out_t = TH * W * Cout * 2            # bf16 output tile
    dbuf = 2 * (in_t + halo_t + w_t + b_t + out_t)
    rows_i = (TH + 2) * Wp * Cin * 2     # in-kernel row concat
    lhs_i = TH * W * 3 * Cin * 2         # per-dy im2col slab (bf16)
    acc_i = TH * W * Cout * 4            # f32 accumulator
    tmp_i = TH * W * Cout * 4            # bias / PReLU / cast temporaries (conservative)
    return int(1.15 * (dbuf + rows_i + lhs_i + acc_i + tmp_i))


def _choose_tile_h(N, H, W, Cin, Cout, budget_bytes):
    """Largest row tile TH (divisor of H) that fits the budget, preferring
    (a) >= 2 total grid steps (keep both v7x TensorCores busy) and
    (b) M = TH*W a multiple of 256 (v6e/v7x MXU width), then 128."""
    divisors = [t for t in range(1, H + 1) if H % t == 0]
    fitting = [t for t in divisors if _step_vmem_bytes(t, W, Cin, Cout) <= budget_bytes]
    if not fitting:
        # Degenerate (very large W): even TH=1 exceeds the budget; fall back and let
        # vmem_limit_bytes absorb it.  (A full fix would additionally tile W.)
        return 1

    def score(t):
        multi_core = N * (H // t) >= 2
        m = t * W
        m_align = 2 if m % 256 == 0 else (1 if m % 128 == 0 else 0)
        return (multi_core, m_align, t)

    return max(fitting, key=score)


def upsample_block(x_nchw, weight_oihw, bias, alpha, up_scale, *, tile_h=None,
                   nchw_output=True):
    """Forward pass of UpsampleBLock.

    x_nchw: (N, Cin, H, W) float32.  Returns NCHW float32 by default; pass
    nchw_output=False to get the bf16 NHWC result and skip the final transpose
    entirely (cheapest when the consumer can take channels-last).
    """
    N, Cin, H, W = x_nchw.shape
    r = int(up_scale)
    Cout = Cin * r * r
    assert weight_oihw.shape == (Cout, Cin, 3, 3), weight_oihw.shape
    Wp = W + 2

    budget, vmem_limit = _vmem_budget_and_limit()
    if tile_h is None:
        tile_h = _choose_tile_h(N, H, W, Cin, Cout, budget)
    TH = int(tile_h)
    assert H % TH == 0, (H, TH)
    n_h = H // TH

    # ---- layout prep (plain JAX; no 3x dy-fold materialization) ----
    # Single fused transpose+cast to bf16, then the 3x3 same-pad.  bf16 inputs/weights
    # with f32 accumulation in the kernel is intentional (matches _reference tolerance).
    x_nhwc = jnp.transpose(x_nchw, (0, 2, 3, 1)).astype(jnp.bfloat16)
    x_pad = jnp.pad(x_nhwc, ((0, 0), (1, 1), (1, 1), (0, 0)))           # (N, H+2, Wp, Cin)
    # Tiny per-tile bottom halo: padded rows [(h+1)*TH, (h+1)*TH + 2) for each row tile.
    halo_rows = (np.arange(1, n_h + 1)[:, None] * TH + np.arange(2)[None, :]).reshape(-1)
    x_halo = x_pad[:, halo_rows].reshape(N, n_h, 2, Wp, Cin)

    # Weights: (co, ci, ky, kx) -> (ky, kx*Cin + ci, co), then permute output columns
    # from (c, i, j) to (i, j, c) so pixel shuffle is a pure column split post-matmul.
    w = jnp.transpose(weight_oihw.astype(jnp.float32), (2, 3, 1, 0)).reshape(3, 3 * Cin, Cout)
    w = (w.reshape(3, 3 * Cin, Cin, r * r).transpose(0, 1, 3, 2)
          .reshape(3, 3 * Cin, Cout)).astype(jnp.bfloat16)
    b = bias.astype(jnp.float32).reshape(Cin, r * r).T.reshape(1, Cout)
    a = jnp.reshape(alpha, (1,)).astype(jnp.float32)

    kernel = functools.partial(_upsample_kernel, TH=TH, W=W, Cin=Cin, r=r)

    out5 = pl.pallas_call(
        kernel,
        out_shape=jax.ShapeDtypeStruct((N, H, r, W, r * Cin), jnp.bfloat16),
        grid_spec=pltpu.PrefetchScalarGridSpec(
            num_scalar_prefetch=0,
            grid=(N, n_h),
            in_specs=[
                # x_pad has H+2 rows; blocks of TH rows at indices 0..n_h-1 stay fully
                # in-bounds (the 2 bottom pad rows arrive via the halo input instead).
                # NOTE: if xprof shows exposed input-DMA waits at large TH, add
                # pipeline_mode=pl.Buffered(3) here (the input tile is the smallest buffer).
                pl.BlockSpec((1, TH, Wp, Cin), lambda n, h: (n, h, 0, 0)),
                pl.BlockSpec((1, 1, 2, Wp, Cin), lambda n, h: (n, h, 0, 0, 0)),
                pl.BlockSpec((3, 3 * Cin, Cout), lambda n, h: (0, 0, 0)),
                pl.BlockSpec((1, Cout), lambda n, h: (0, 0)),
                pl.BlockSpec(memory_space=pltpu.MemorySpace.SMEM),       # alpha scalar
            ],
            out_specs=pl.BlockSpec((1, TH, r, W, r * Cin),
                                   lambda n, h: (n, h, 0, 0, 0)),
        ),
        compiler_params=pltpu.CompilerParams(
            dimension_semantics=("parallel", "parallel"),
            vmem_limit_bytes=vmem_limit,
        ),
    )(x_pad, x_halo, w, b, a)

    # (N, H, r, W, r*Cin) is the pixel-shuffled NHWC data in linear order -> free reshape.
    out_nhwc = out5.reshape(N, H * r, W * r, Cin)
    if not nchw_output:
        return out_nhwc                                    # bf16 NHWC, no extra HBM pass
    # Final transpose runs on bf16 (half the traffic of an f32 transpose); widen last.
    return jnp.transpose(out_nhwc, (0, 3, 1, 2)).astype(jnp.float32)


def _reference(x_nchw, weight_oihw, bias, alpha, up_scale):
    """Pure-JAX reference (bf16-rounded inputs, f32 math) for correctness checking."""
    xb = x_nchw.astype(jnp.bfloat16).astype(jnp.float32)
    wb = weight_oihw.astype(jnp.bfloat16).astype(jnp.float32)
    y = lax.conv_general_dilated(
        xb, wb, window_strides=(1, 1), padding=((1, 1), (1, 1)),
        dimension_numbers=("NCHW", "OIHW", "NCHW"),
        precision=lax.Precision.HIGHEST)
    y = y + bias.astype(jnp.float32).reshape(1, -1, 1, 1)
    N, Cout, H, W = y.shape
    r = int(up_scale)
    Cin = Cout // (r * r)
    y = y.reshape(N, Cin, r, r, H, W)
    y = jnp.transpose(y, (0, 1, 4, 2, 5, 3)).reshape(N, Cin, H * r, W * r)
    a = jnp.reshape(alpha, ())
    return jnp.where(y >= 0.0, y, a * y)


def _run_case(key, N, Cin, H, W, r, tile_h=None):
    Cout = Cin * r * r
    kx, kw, kb = jax.random.split(key, 3)
    x = jax.random.normal(kx, (N, Cin, H, W), dtype=jnp.float32)
    weight = jax.random.normal(kw, (Cout, Cin, 3, 3), dtype=jnp.float32) * 0.1
    bias = jax.random.normal(kb, (Cout,), dtype=jnp.float32) * 0.1
    alpha = jnp.float32(0.25)                         # nn.PReLU() default init

    out = jax.block_until_ready(upsample_block(x, weight, bias, alpha, r, tile_h=tile_h))
    ref = jax.block_until_ready(_reference(x, weight, bias, alpha, r))
    assert out.shape == (N, Cin, H * r, W * r), out.shape
    max_err = float(jnp.max(jnp.abs(out - ref)))
    # Kernel output is bf16 by design -> ~0.4% relative rounding on top of bf16 inputs.
    assert jnp.allclose(out, ref, atol=2e-2, rtol=2e-2), max_err


if __name__ == "__main__":
    root = jax.random.PRNGKey(0)
    k1, k2 = jax.random.split(root)
    # Small shapes consistent with the module (batch=2, channels=4, spatial=16, r=2);
    # explicit tile_h=8 exercises the row-tiling + halo path (grid = (2, 2)).
    _run_case(k1, N=2, Cin=4, H=16, W=16, r=2, tile_h=8)
    # Production-like channel count at tiny spatial size: r*Cin = 128 (lane-dense stores);
    # N=1 exercises the auto tile choice that keeps >= 2 grid steps for the v7x TC split.
    _run_case(k2, N=1, Cin=64, H=8, W=8, r=2)
    print("KERNEL_OK")
</pallas_src>

<mosaic_0001>
module attributes {stable_mosaic.version = 11 : i64} {
  func.func @_upsample_kernel(%arg0: i32, %arg1: i32, %arg2: memref<1x8x18x4xbf16, #tpu.memory_space<vmem>>, %arg3: memref<1x1x2x18x4xbf16, #tpu.memory_space<vmem>>, %arg4: memref<3x12x16xbf16, #tpu.memory_space<vmem>>, %arg5: memref<1x16xf32, #tpu.memory_space<vmem>>, %arg6: memref<1xf32, #tpu.memory_space<smem>>, %arg7: memref<1x8x2x16x8xbf16, #tpu.memory_space<vmem>>) attributes {dimension_semantics = [#tpu.dimension_semantics<parallel>, #tpu.dimension_semantics<parallel>], iteration_bounds = array<i64: 2, 2>, scalar_prefetch = 0 : i64, scratch_operands = 0 : i64, tpu.core_type = #tpu.core_type<tc>, window_params = [{transform_indices = @transform_0, window_bounds = array<i64: 1, 8, 18, 4>}, {transform_indices = @transform_1, window_bounds = array<i64: 1, 1, 2, 18, 4>}, {pipeline_mode = #tpu.pipeline_mode<synchronous>, transform_indices = @transform_2, window_bounds = array<i64: 3, 12, 16>}, {pipeline_mode = #tpu.pipeline_mode<synchronous>, transform_indices = @transform_3, window_bounds = array<i64: 1, 16>}, {transform_indices = @transform_4, window_bounds = array<i64: 1>}, {transform_indices = @transform_5, window_bounds = array<i64: 1, 8, 2, 16, 8>}]} {
    %c0 = arith.constant 0 : index
    %c0_0 = arith.constant 0 : index
    %c0_1 = arith.constant 0 : index
    %c0_2 = arith.constant 0 : index
    %0 = vector.load %arg2[%c0, %c0_0, %c0_1, %c0_2] : memref<1x8x18x4xbf16, #tpu.memory_space<vmem>>, vector<1x8x18x4xbf16>
    %1 = vector.shape_cast %0 : vector<1x8x18x4xbf16> to vector<8x18x4xbf16>
    %c0_3 = arith.constant 0 : index
    %c0_4 = arith.constant 0 : index
    %c0_5 = arith.constant 0 : index
    %c0_6 = arith.constant 0 : index
    %c0_7 = arith.constant 0 : index
    %2 = vector.load %arg3[%c0_3, %c0_4, %c0_5, %c0_6, %c0_7] : memref<1x1x2x18x4xbf16, #tpu.memory_space<vmem>>, vector<1x1x2x18x4xbf16>
    %3 = vector.shape_cast %2 : vector<1x1x2x18x4xbf16> to vector<2x18x4xbf16>
    %4 = tpu.concatenate %1, %3 in 0 : vector<8x18x4xbf16>, vector<2x18x4xbf16> -> vector<10x18x4xbf16>
    %5 = vector.extract_strided_slice %4 {offsets = [0, 0, 0], sizes = [8, 18, 4], strides = [1, 1, 1]} : vector<10x18x4xbf16> to vector<8x18x4xbf16>
    %6 = vector.extract_strided_slice %5 {offsets = [0, 0, 0], sizes = [8, 16, 4], strides = [1, 1, 1]} : vector<8x18x4xbf16> to vector<8x16x4xbf16>
    %7 = vector.extract_strided_slice %5 {offsets = [0, 1, 0], sizes = [8, 16, 4], strides = [1, 1, 1]} : vector<8x18x4xbf16> to vector<8x16x4xbf16>
    %8 = vector.extract_strided_slice %5 {offsets = [0, 2, 0], sizes = [8, 16, 4], strides = [1, 1, 1]} : vector<8x18x4xbf16> to vector<8x16x4xbf16>
    %9 = tpu.concatenate %6, %7, %8 in 2 : vector<8x16x4xbf16>, vector<8x16x4xbf16>, vector<8x16x4xbf16> -> vector<8x16x12xbf16>
    %10 = vector.shape_cast %9 : vector<8x16x12xbf16> to vector<128x12xbf16>
    %c0_8 = arith.constant 0 : index
    %c0_9 = arith.constant 0 : index
    %c0_10 = arith.constant 0 : index
    %11 = vector.load %arg4[%c0_8, %c0_9, %c0_10] : memref<3x12x16xbf16, #tpu.memory_space<vmem>>, vector<1x12x16xbf16>
    %12 = vector.shape_cast %11 : vector<1x12x16xbf16> to vector<12x16xbf16>
    %cst = arith.constant dense<0.000000e+00> : vector<128x16xf32>
    %13 = tpu.matmul %10, %12, %cst {dimension_numbers = #tpu.dot_dimension_numbers<[1], [0], [0], [1], [0, 0, 1, 1], [], []>} : vector<128x12xbf16>, vector<12x16xbf16>, vector<128x16xf32> -> vector<128x16xf32>
    %14 = vector.extract_strided_slice %4 {offsets = [1, 0, 0], sizes = [8, 18, 4], strides = [1, 1, 1]} : vector<10x18x4xbf16> to vector<8x18x4xbf16>
    %15 = vector.extract_strided_slice %14 {offsets = [0, 0, 0], sizes = [8, 16, 4], strides = [1, 1, 1]} : vector<8x18x4xbf16> to vector<8x16x4xbf16>
    %16 = vector.extract_strided_slice %14 {offsets = [0, 1, 0], sizes = [8, 16, 4], strides = [1, 1, 1]} : vector<8x18x4xbf16> to vector<8x16x4xbf16>
    %17 = vector.extract_strided_slice %14 {offsets = [0, 2, 0], sizes = [8, 16, 4], strides = [1, 1, 1]} : vector<8x18x4xbf16> to vector<8x16x4xbf16>
    %18 = tpu.concatenate %15, %16, %17 in 2 : vector<8x16x4xbf16>, vector<8x16x4xbf16>, vector<8x16x4xbf16> -> vector<8x16x12xbf16>
    %19 = vector.shape_cast %18 : vector<8x16x12xbf16> to vector<128x12xbf16>
    %c1 = arith.constant 1 : index
    %c0_11 = arith.constant 0 : index
    %c0_12 = arith.constant 0 : index
    %20 = vector.load %arg4[%c1, %c0_11, %c0_12] : memref<3x12x16xbf16, #tpu.memory_space<vmem>>, vector<1x12x16xbf16>
    %21 = vector.shape_cast %20 : vector<1x12x16xbf16> to vector<12x16xbf16>
    %cst_13 = arith.constant dense<0.000000e+00> : vector<128x16xf32>
    %22 = tpu.matmul %19, %21, %cst_13 {dimension_numbers = #tpu.dot_dimension_numbers<[1], [0], [0], [1], [0, 0, 1, 1], [], []>} : vector<128x12xbf16>, vector<12x16xbf16>, vector<128x16xf32> -> vector<128x16xf32>
    %23 = arith.addf %13, %22 : vector<128x16xf32>
    %24 = vector.extract_strided_slice %4 {offsets = [2, 0, 0], sizes = [8, 18, 4], strides = [1, 1, 1]} : vector<10x18x4xbf16> to vector<8x18x4xbf16>
    %25 = vector.extract_strided_slice %24 {offsets = [0, 0, 0], sizes = [8, 16, 4], strides = [1, 1, 1]} : vector<8x18x4xbf16> to vector<8x16x4xbf16>
    %26 = vector.extract_strided_slice %24 {offsets = [0, 1, 0], sizes = [8, 16, 4], strides = [1, 1, 1]} : vector<8x18x4xbf16> to vector<8x16x4xbf16>
    %27 = vector.extract_strided_slice %24 {offsets = [0, 2, 0], sizes = [8, 16, 4], strides = [1, 1, 1]} : vector<8x18x4xbf16> to vector<8x16x4xbf16>
    %28 = tpu.concatenate %25, %26, %27 in 2 : vector<8x16x4xbf16>, vector<8x16x4xbf16>, vector<8x16x4xbf16> -> vector<8x16x12xbf16>
    %29 = vector.shape_cast %28 : vector<8x16x12xbf16> to vector<128x12xbf16>
    %c2 = arith.constant 2 : index
    %c0_14 = arith.constant 0 : index
    %c0_15 = arith.constant 0 : index
    %30 = vector.load %arg4[%c2, %c0_14, %c0_15] : memref<3x12x16xbf16, #tpu.memory_space<vmem>>, vector<1x12x16xbf16>
    %31 = vector.shape_cast %30 : vector<1x12x16xbf16> to vector<12x16xbf16>
    %cst_16 = arith.constant dense<0.000000e+00> : vector<128x16xf32>
    %32 = tpu.matmul %29, %31, %cst_16 {dimension_numbers = #tpu.dot_dimension_numbers<[1], [0], [0], [1], [0, 0, 1, 1], [], []>} : vector<128x12xbf16>, vector<12x16xbf16>, vector<128x16xf32> -> vector<128x16xf32>
    %33 = arith.addf %23, %32 : vector<128x16xf32>
    %c0_17 = arith.constant 0 : index
    %c0_18 = arith.constant 0 : index
    %34 = vector.load %arg5[%c0_17, %c0_18] : memref<1x16xf32, #tpu.memory_space<vmem>>, vector<1x16xf32>
    %35 = vector.broadcast %34 : vector<1x16xf32> to vector<128x16xf32>
    %36 = arith.addf %33, %35 : vector<128x16xf32>
    %c0_19 = arith.constant 0 : index
    %37 = memref.load %arg6[%c0_19] : memref<1xf32, #tpu.memory_space<smem>>
    %cst_20 = arith.constant 0.000000e+00 : f32
    %38 = vector.broadcast %cst_20 : f32 to vector<128x16xf32>
    %39 = arith.cmpf oge, %36, %38 : vector<128x16xf32>
    %40 = vector.broadcast %37 : f32 to vector<128x16xf32>
    %41 = arith.mulf %40, %36 : vector<128x16xf32>
    %42 = arith.select %39, %36, %41 : vector<128x16xi1>, vector<128x16xf32>
    %43 = vector.extract_strided_slice %42 {offsets = [0, 0], sizes = [128, 8], strides = [1, 1]} : vector<128x16xf32> to vector<128x8xf32>
    %44 = vector.shape_cast %43 : vector<128x8xf32> to vector<8x16x8xf32>
    %45 = arith.truncf %44 : vector<8x16x8xf32> to vector<8x16x8xbf16>
    %c0_21 = arith.constant 0 : index
    %c0_22 = arith.constant 0 : index
    %c0_23 = arith.constant 0 : index
    %c0_24 = arith.constant 0 : index
    %c0_25 = arith.constant 0 : index
    %46 = vector.load %arg7[%c0_21, %c0_22, %c0_23, %c0_24, %c0_25] : memref<1x8x2x16x8xbf16, #tpu.memory_space<vmem>>, vector<1x8x1x16x8xbf16>
    %47 = vector.shape_cast %46 : vector<1x8x1x16x8xbf16> to vector<8x16x8xbf16>
    %48 = vector.shape_cast %45 : vector<8x16x8xbf16> to vector<1x8x1x16x8xbf16>
    tpu.vector_store %arg7[%c0_21, %c0_22, %c0_23, %c0_24, %c0_25], %48 {strides = array<i32>} : memref<1x8x2x16x8xbf16, #tpu.memory_space<vmem>>, vector<1x8x1x16x8xbf16>,
    %49 = vector.extract_strided_slice %42 {offsets = [0, 8], sizes = [128, 8], strides = [1, 1]} : vector<128x16xf32> to vector<128x8xf32>
    %50 = vector.shape_cast %49 : vector<128x8xf32> to vector<8x16x8xf32>
    %51 = arith.truncf %50 : vector<8x16x8xf32> to vector<8x16x8xbf16>
    %c0_26 = arith.constant 0 : index
    %c0_27 = arith.constant 0 : index
    %c1_28 = arith.constant 1 : index
    %c0_29 = arith.constant 0 : index
    %c0_30 = arith.constant 0 : index
    %52 = vector.load %arg7[%c0_26, %c0_27, %c1_28, %c0_29, %c0_30] : memref<1x8x2x16x8xbf16, #tpu.memory_space<vmem>>, vector<1x8x1x16x8xbf16>
    %53 = vector.shape_cast %52 : vector<1x8x1x16x8xbf16> to vector<8x16x8xbf16>
    %54 = vector.shape_cast %51 : vector<8x16x8xbf16> to vector<1x8x1x16x8xbf16>
    tpu.vector_store %arg7[%c0_26, %c0_27, %c1_28, %c0_29, %c0_30], %54 {strides = array<i32>} : memref<1x8x2x16x8xbf16, #tpu.memory_space<vmem>>, vector<1x8x1x16x8xbf16>,
    return
  }
  func.func @transform_0(%arg0: i32, %arg1: i32) -> (i32, i32, i32, i32) {
    %c0_i32 = arith.constant 0 : i32
    %c0_i32_0 = arith.constant 0 : i32
    %c0_i32_1 = arith.constant 0 : i32
    return %arg0, %arg1, %c0_i32, %c0_i32_0 : i32, i32, i32, i32
  }
  func.func @transform_1(%arg0: i32, %arg1: i32) -> (i32, i32, i32, i32, i32) {
    %c0_i32 = arith.constant 0 : i32
    %c0_i32_0 = arith.constant 0 : i32
    %c0_i32_1 = arith.constant 0 : i32
    %c0_i32_2 = arith.constant 0 : i32
    return %arg0, %arg1, %c0_i32, %c0_i32_0, %c0_i32_1 : i32, i32, i32, i32, i32
  }
  func.func @transform_2(%arg0: i32, %arg1: i32) -> (i32, i32, i32) {
    %c0_i32 = arith.constant 0 : i32
    %c0_i32_0 = arith.constant 0 : i32
    %c0_i32_1 = arith.constant 0 : i32
    %c0_i32_2 = arith.constant 0 : i32
    return %c0_i32, %c0_i32_0, %c0_i32_1 : i32, i32, i32
  }
  func.func @transform_3(%arg0: i32, %arg1: i32) -> (i32, i32) {
    %c0_i32 = arith.constant 0 : i32
    %c0_i32_0 = arith.constant 0 : i32
    %c0_i32_1 = arith.constant 0 : i32
    return %c0_i32, %c0_i32_0 : i32, i32
  }
  func.func @transform_4(%arg0: i32, %arg1: i32) -> i32 {
    %c0_i32 = arith.constant 0 : i32
    %c0_i32_0 = arith.constant 0 : i32
    return %c0_i32 : i32
  }
  func.func @transform_5(%arg0: i32, %arg1: i32) -> (i32, i32, i32, i32, i32) {
    %c0_i32 = arith.constant 0 : i32
    %c0_i32_0 = arith.constant 0 : i32
    %c0_i32_1 = arith.constant 0 : i32
    %c0_i32_2 = arith.constant 0 : i32
    return %arg0, %arg1, %c0_i32, %c0_i32_0, %c0_i32_1 : i32, i32, i32, i32, i32
  }
}

</mosaic_0001>

<bundles_post_ra>
// kernel: tpu_custom_call.1
= control target key start
LH: loop header
LB: loop body
LE: loop exit
PB: predicated region body
PF: predicated region fallthrough
CT: control target
= control target key end

     0   :  { %s1721_s20 = smov 0   ;;  %s1723_s21 = smov 0   ;;  %s2138_s0 = inlined_call_operand.vmem [shape: bf16[2,18,18,4], index: 0, kind: input, shape index: {}]   ;;  %s2139_s1 = inlined_call_operand.vmem [shape: bf16[2,2,2,18,4], index: 1, kind: input, shape index: {}]   ;;  %s2140_s2 = inlined_call_operand.vmem [shape: bf16[3,12,16], index: 2, kind: input, shape index: {}]   ;;  %s2141_s3 = inlined_call_operand.vmem [shape: f32[1,16], index: 3, kind: input, shape index: {}]   ;;  %s2142_s4 = inlined_call_operand.<no memory space> [shape: f32[1], index: 4, kind: input, shape index: {}]   ;;  %s2143_s5 = inlined_call_operand.vmem [shape: bf16[2,16,2,16,8], index: 5, kind: output, shape index: {}]  }
   0x1   :  { %10 = sst [smem:[#allocation2]] %s2142_s4  ;;  %s1725_s22 = smov 0  }
   0x2   :  { %s1727_s23 = smov 0   ;;  %s1729_s24 = smov 0  }
   0x3 LB: > { %s25_s4 = sadd.s32 1, %s1675_s22  ;;  %s28_s25 = sadd.s32 1, %s1679_s23  ;;  %s1683_s24 = sphi %s1729_s24, %s16_s24   ;;  %s1679_s23 = sphi %s1727_s23, %s2147_s23   ;;  %s1675_s22 = sphi %s1725_s22, %s2146_s22   ;;  %s1671_s21 = sphi %s1723_s21, %s2145_s21   ;;  %s1667_s20 = sphi %s1721_s20, %s2144_s20  }
   0x4   : > { %p26_p0 = scmp.ge.s32.totalorder %s25_s4, 2  ;;  %p1378_p1 = scmp.ge.s32.totalorder %s1683_s24, 1 }
   0x5   : > { %p236_p2 = scmp.lt.s32.totalorder %s1683_s24, 5 }
   0x6   : > { %s2149_s4 = smov (%p26_p0, %s25_s4), 0  ;;  %s2151_s25 = smov (!%p26_p0, %s28_s25), %s1679_s23 }
   0x7   : > { %p237_p3 = pnand %p1378_p1, %p236_p2  ;;  %p30_p4 = scmp.ge.s32.totalorder %s2151_s25, 2 }
   0x8   : > { %s1379_s26 = sshll.u32 (!%p237_p3), %s1667_s20, 3  ;;  %p294_p5 = scmp.lt.s32.totalorder (!%p237_p3), %s1671_s21, 1 }
   0x9   : > { %s2153_s25 = smov (%p30_p4, %s2151_s25), 0  ;;  %240 = sbr.rel (%p237_p3) target bundleno = 537 (0x219), region = 40 }
   0xa   : > { %p296_p6 = scmp.lt.s32.totalorder (!%p237_p3), %s1379_s26, 17  ;;  %p321_p7 = scmp.lt.s32.totalorder (!%p237_p3), %s1379_s26, 15 }
   0xb   : > { %p311_p8 = scmp.lt.s32.totalorder (!%p237_p3), %s1667_s20, 1  ;;  %s1685_s13 = smov (!%p237_p3), 8  }
   0xe   : > { %s2155_s21 = smov (!%p294_p5, %s1671_s21), 1  ;;  %vm537_vm0 = vcmask 1046528   ;;  %s2159_s20 = smov (!%p311_p8, %s1667_s20), 1  ;;  %vm424_vm1 = vsmask.f32 7424  ;;  %vm670_vm2 = vcmask 1045504  }
   0xf   : > { %s297_s27 = scalar_select %p296_p6, %s1379_s26, 17  ;;  %vm595_vm3 = vcmask 64512   ;;  %vm578_vm4 = vcmask 31744   ;;  %vm653_vm5 = vcmask 97280   ;;  %vm1172_vm7 = vcmask 60416  }
  0x10   : > { %s1576_s28 = smul.u32 54, %s2155_s21  ;;  %s1384_s30 = sshll.u32 %s2155_s21, 6 }
  0x11   : > { %s1575_s29 = smul.u32 3, %s297_s27  ;;  %s2157_s26 = smov (!%p321_p7, %s1379_s26), 15 }
  0x12   : > { %s1383_s8 = sshll.u32 %s2157_s26, 2  ;;  %s1578_s14 = smul.u32 12, %s2155_s21 }
  0x13   : > { %s300_s6 = sadd.s32 %s1576_s28, %s1575_s29  ;;  %s1763_s12 = sadd.s32 %s1384_s30, %s1383_s8 }
  0x14   : > { %s1380_s7 = sshll.u32 %s300_s6, 2  ;;  %s1577_s15 = smul.u32 6, %s2159_s20 }
  0x15   : > { %s1761_s11 = scalar_lea.vmem %s2138_s0, %s1380_s7  ;;  %s1686_s21 = smov 4  }
  0x16   : > { %v1766_v0 = vld [vmem:[%s1761_s11 + $0x48] sm:$0xff]   ;;  %v1770_v1 = vld [vmem:[%s1761_s11 + $0x50] ss:$0 sps:$4 sm:$0x11]   ;;  %v1773_v2 = vld [vmem:[%s1761_s11 + $0x3c] sm:$0xff]   ;;  %s315_s16 = sadd.s32 %s1578_s14, %s1577_s15  ;;  %s1058_s7 = sld [smem:[#allocation2]] }
  0x17   : > { %v556_v3 = vrot.slane %v1766_v0, 1  ;;  %v1777_v4 = vld [vmem:[%s1761_s11 + $0x18] sm:$0xff]   ;;  %v557_v5 = vrot.slane %v1770_v1, 1  ;;  %v1625_v6 = vld [vmem:[%s1761_s11 + $0x44] ss:$0 sps:$4 sm:$0x11]  }
  0x18   : > { %v553_v7 = vrot.slane %v1773_v2, 1  ;;  %v544_v8 = vrot.slane %v1777_v4, 1  ;;  %v554_v10 = vrot.slane %v1625_v6, 1  ;;  %v1627_v11 = vld [vmem:[%s1761_s11 + $0x20] ss:$0 sps:$4 sm:$0x11]  }
  0x19   : > { %v558_v9 = vsel %vm537_vm0, %v556_v3, %v557_v5  ;;  %v545_v13 = vrot.slane %v1627_v11, 1  ;;  %v1788_v14 = vld [vmem:[%s1761_s11 + $0xc] sm:$0xff]   ;;  %v1629_v15 = vld [vmem:[%s1761_s11 + $0x14] ss:$0 sps:$4 sm:$0x11]   ;;  %v488_v30 = vshll.u32 %v1773_v2, 16 }
  0x1a   : > { %574 = vrot.lane.b32.xlu0 %v558_v9, %s1685_s13  ;;  %v555_v12 = vsel %vm537_vm0, %v553_v7, %v554_v10  ;;  %v1792_v16 = vld [vmem:[%s1761_s11 + $0x54] sm:$0xff]   ;;  %v541_v18 = vrot.slane %v1788_v14, 1  ;;  %v542_v19 = vrot.slane %v1629_v15, 1  ;;  %v1798_v20 = vld [vmem:[%s1761_s11 + $0x5c] ss:$0 sps:$4 sm:$0x11]  }
  0x1b   : > { %572 = vrot.lane.b32.xlu1 %v555_v12, %s1685_s13  ;;  %v546_v17 = vsel %vm537_vm0, %v544_v8, %v545_v13  ;;  %v559_v21 = vrot.slane %v1792_v16, 1  ;;  %v438_v22 = vshrl.u32 %v1788_v14, 16  ;;  %v560_v24 = vrot.slane %v1798_v20, 1  ;;  %s1381_s17 = sshll.u32 %s315_s16, 2  ;;  %v1817_v36 = vld [vmem:[%s1761_s11 + $0x24] sm:$0xff]   ;;  %v1830_v41 = vld [vmem:[%s1761_s11 + $0x30] sm:$0xff]  }
  0x1c   : > { %v543_v23 = vsel %vm537_vm0, %v541_v18, %v542_v19  ;;  %v440_v25 = vshll.u32 %v1788_v14, 16  ;;  %v445_v26 = vshll.u32 %v1629_v15, 16  ;;  %v450_v31 = vshrl.u32 %v1777_v4, 16  ;;  %s1823_s20 = scalar_lea.vmem %s2139_s1, %s1381_s17  ;;  %v1826_v39 = vld [vmem:[%s1761_s11 + $0x2c] ss:$0 sps:$4 sm:$0x11]  }
  0x1d   : > { %v561_v27 = vsel %vm537_vm0, %v559_v21, %v560_v24  ;;  %v452_v32 = vshll.u32 %v1777_v4, 16  ;;  %v486_v33 = vshrl.u32 %v1773_v2, 16  ;;  %v457_v35 = vshll.u32 %v1627_v11, 16  ;;  %v1833_v42 = vld [vmem:[%s1823_s20] sm:$0xff]   ;;  %s1385_s10 = sshll.u32 %s1763_s12, 2  ;;  %s1687_s12 = smov 120  }
  0x1e   : > { %564 = vrot.lane.b32.xlu0 %v543_v23, %s1685_s13  ;;  %v442_v28 = vrot.slane %v440_v25, 1  ;;  %v447_v29 = vrot.slane %v445_v26, 1  ;;  %v493_v37 = vshll.u32 %v1625_v6, 16  ;;  %v1836_v43 = vld [vmem:[%s1823_s20 + $0x8] ss:$0 sps:$4 sm:$0x11]   ;;  %s2004_s14 = scalar_lea.vmem %s2143_s5, %s1385_s10 }
  0x1f   : > { %566 = vrot.lane.b32.xlu1 %v546_v17, %s1685_s13  ;;  %v454_v38 = vrot.slane %v452_v32, 1  ;;  %v490_v44 = vrot.slane %v488_v30, 1  ;;  %v459_v46 = vrot.slane %v457_v35, 1  ;;  %v500_v47 = vshll.u32 %v1766_v0, 16  ;;  %v1644_v30 = vld [vmem:[%s2140_s2 + $0x10] sm:$0x3f]  }
  0x20   : > { %v443_v34 = vor.u32 %v442_v28, %v438_v22  ;;  %v462_v48 = vshrl.u32 %v1817_v36, 16  ;;  %v464_v49 = vshll.u32 %v1817_v36, 16  ;;  %v469_v50 = vshll.u32 %v1826_v39, 16  ;;  %v1637_v5 = vld [vmem:[%s1761_s11 + $0x38] ss:$0 sps:$4 sm:$0x11]  }
  0x21   : > { %v455_v45 = vor.u32 %v454_v38, %v450_v31  ;;  %v623_v51 = vshrl.u32 %v1833_v42, 16  ;;  %v625_v52 = vshll.u32 %v1833_v42, 16  ;;  %v630_v53 = vshll.u32 %v1836_v43, 16  ;;  %v1867_v28 = vld [vmem:[%s1761_s11] sm:$0xff]  }
  0x22   : > { %v448_v40 = vsel %vm424_vm1, %v443_v34, %v447_v29  ;;  %v495_v54 = vrot.slane %v493_v37, 1  ;;  %v498_v55 = vshrl.u32 %v1766_v0, 16  ;;  %v466_v57 = vrot.slane %v464_v49, 1  ;;  %v1643_v29 = vld [vmem:[%s2140_s2] sm:$0x3f]  }
  0x23   : > { %576 = vrot.lane.b32.xlu1 %v561_v27, %s1685_s13  ;;  %v460_v56 = vsel %vm424_vm1, %v455_v45, %v459_v46  ;;  %v471_v58 = vrot.slane %v469_v50, 1  ;;  %v627_v59 = vrot.slane %v625_v52, 1  ;;  %v632_v60 = vrot.slane %v630_v53, 1  ;;  %v1642_v27 = vld [vmem:[%s2140_s2 + $0x8] sm:$0x3f]  }
  0x24   : > { %v491_v61 = vor.u32 %v490_v44, %v486_v33  ;;  %v505_v62 = vshll.u32 %v1770_v1, 16  ;;  %v502_v63 = vrot.slane %v500_v47, 1  ;;  %v467_v3 = vor.u32 %v466_v57, %v462_v48  ;;  %1571 = vmatprep.subr.msk.bf16.mxu0 %vm670_vm2, %v1642_v27  ;;  %1572 = vmatprep.subr.msk.bf16.mxu1 %vm670_vm2, %v1642_v27  ;;  %v1892_v47 = vld [vmem:[%s1823_s20 + $0xc] sm:$0xff]   ;;  %v1641_v48 = vld [vmem:[%s1823_s20 + $0x14] ss:$0 sps:$4 sm:$0x11]  }
  0x25   : > { %v474_v6 = vshrl.u32 %v1830_v41, 16  ;;  %v476_v7 = vshll.u32 %v1830_v41, 16  ;;  %v628_v8 = vor.u32 %v627_v59, %v623_v51  ;;  %v512_v9 = vshll.u32 %v1792_v16, 16 }
  0x26   : > { %v472_v10 = vsel %vm424_vm1, %v467_v3, %v471_v58  ;;  %v481_v12 = vshll.u32 %v1637_v5, 16  ;;  %v507_v1 = vrot.slane %v505_v62, 1  ;;  %v510_v15 = vshrl.u32 %v1792_v16, 16 }
  0x27   : > { %523 = vrot.lane.b32.xlu1 %v448_v40, %s1686_s21  ;;  %v478_v11 = vrot.slane %v476_v7, 1  ;;  %v633_v13 = vsel %vm424_vm1, %v628_v8, %v632_v60  ;;  %v496_v17 = vsel %vm424_vm1, %v491_v61, %v495_v54  ;;  %v503_v18 = vor.u32 %v502_v63, %v498_v55 }
  0x28   : > { %634 = vrot.lane.b32.xlu0 %v633_v13, %s1686_s21  ;;  %v483_v21 = vrot.slane %v481_v12, 1  ;;  %v514_v22 = vrot.slane %v512_v9, 1  ;;  %v517_v23 = vshll.u32 %v1798_v20, 16  ;;  %v550_v24 = vrot.slane %v1830_v41, 1 }
  0x29   : > { %v479_v19 = vor.u32 %v478_v11, %v474_v6  ;;  %v551_v25 = vrot.slane %v1637_v5, 1  ;;  %v1639_v20 = vld [vmem:[%s1761_s11 + $0x8] ss:$0 sps:$4 sm:$0x11]   ;;  %v508_v31 = vsel %vm424_vm1, %v503_v18, %v507_v1  ;;  %v538_v35 = vrot.slane %v1867_v28, 1 }
  0x2a   : > { %v515_v32 = vor.u32 %v514_v22, %v510_v15  ;;  %v519_v33 = vrot.slane %v517_v23, 1  ;;  %v539_v37 = vrot.slane %v1639_v20, 1  ;;  %v672_v38 = vsel %vm670_vm2, %v1642_v27, 0 }
  0x2b   : > { %525 = vrot.lane.b32.xlu1 %v460_v56, %s1686_s21  ;;  %v484_v26 = vsel %vm424_vm1, %v479_v19, %v483_v21  ;;  %v552_v34 = vsel %vm537_vm0, %v550_v24, %v551_v25  ;;  %v1885_v40 = vsel %vm670_vm2, %v1643_v29, 0  ;;  %1516 = vmatpush3.bf16.msra.mxu0 %v672_v38  ;;  %v920_v44 = vsel %vm670_vm2, %v1644_v30, 0 }
  0x2c   : > { %531 = vrot.lane.b32.xlu0 %v496_v17, %s1686_s21  ;;  %1570 = vmatpush3.bf16.msra.mxu1 %v672_v38  ;;  %v636_v45 = vrot.slane %v1833_v42, 1  ;;  %v637_v46 = vrot.slane %v1836_v43, 1  ;;  %v520_v49 = vsel %vm424_vm1, %v515_v32, %v519_v33  ;;  %v428_v50 = vshll.u32 %v1867_v28, 16 }
  0x2d   : > { %1573 = vmatprep.subr.msk.bf16.mxu1 %vm670_vm2, %v1643_v29  ;;  %1574 = vmatprep.subr.msk.bf16.mxu0 %vm670_vm2, %v1644_v30  ;;  %v540_v51 = vsel %vm537_vm0, %v538_v35, %v539_v37  ;;  %v900_v52 = vrot.slane %v1892_v47, 1  ;;  %v901_v53 = vrot.slane %v1641_v48, 1  ;;  %v547_v54 = vrot.slane %v1817_v36, 1 }
  0x2e   : > { %v638_v43 = vsel %vm537_vm0, %v636_v45, %v637_v46  ;;  %v548_v55 = vrot.slane %v1826_v39, 1  ;;  %v426_v56 = vshrl.u32 %v1867_v28, 16  ;;  %v430_v57 = vrot.slane %v428_v50, 1 }
  0x2f   : > { %527 = vrot.lane.b32.xlu1 %v472_v10, %s1686_s21  ;;  %v433_v58 = vshll.u32 %v1639_v20, 16  ;;  %v889_v59 = vshll.u32 %v1892_v47, 16  ;;  %v902_v60 = vsel %vm537_vm0, %v900_v52, %v901_v53  ;;  %v887_v62 = vshrl.u32 %v1892_v47, 16 }
  0x30   : > { %533 = vrot.lane.b32.xlu0 %v508_v31, %s1686_s21  ;;  %v549_v61 = vsel %vm537_vm0, %v547_v54, %v548_v55  ;;  %v431_v63 = vor.u32 %v430_v57, %v426_v56  ;;  %v894_v39 = vshll.u32 %v1641_v48, 16 }
  0x31   : > { %v435_v3 = vrot.slane %v433_v58, 1  ;;  %v891_v5 = vrot.slane %v889_v59, 1 }
  0x32   : > { %v896_v8 = vrot.slane %v894_v39, 1 }
  0x33   : > { %529 = vrot.lane.b32.xlu1 %v484_v26, %s1686_s21  ;;  %v436_v6 = vsel %vm424_vm1, %v431_v63, %v435_v3  ;;  %v892_v7 = vor.u32 %v891_v5, %v887_v62 }
  0x34   : > { %535 = vrot.lane.b32.xlu0 %v520_v49, %s1686_s21 }
  0x35   : > { %v897_v9 = vsel %vm424_vm1, %v892_v7, %v896_v8  ;;  %v1993_v7 = vld [vmem:[%s2141_s3] ss:$0 sm:$0xff] }
  0x37   : > { %570 = vrot.lane.b32.xlu1 %v552_v34, %s1685_s13 }
  0x38   : > { %639 = vrot.lane.b32.xlu0 %v638_v43, %s1685_s13 }
  0x3b   : > { %562 = vrot.lane.b32.xlu1 %v540_v51, %s1685_s13 }
  0x3c   : > { %568 = vrot.lane.b32.xlu0 %v549_v61, %s1685_s13 }
  0x3f   : > { %903 = vrot.lane.b32.xlu1 %v902_v60, %s1685_s13 }
  0x40   : > { %521 = vrot.lane.b32.xlu0 %v436_v6, %s1686_s21 }
  0x44   : > { %898 = vrot.lane.b32.xlu0 %v897_v9, %s1686_s21 }
  0x8c   : > { %v575_v12 = vpop.permute.xlu0 %574 }
  0x8d   : > { %v573_v10 = vpop.permute.xlu1 %572 }
  0x90   : > { %v565_v15 = vpop.permute.xlu0 %564 }
  0x91   : > { %v567_v11 = vpop.permute.xlu1 %566 }
  0x95   : > { %v577_v13 = vpop.permute.xlu1 %576 }
  0x99   : > { %v524_v1 = vpop.permute.xlu1 %523 }
  0x9a   : > { %v582_v17 = vsel %vm578_vm4, %v1788_v14, %v524_v1  ;;  %v635_v23 = vpop.permute.xlu0 %634 }
  0x9b   : > { %v599_v18 = vsel %vm595_vm3, %v582_v17, %v565_v15  ;;  %v642_v32 = vsel %vm578_vm4, %v1833_v42, %v635_v23 }
  0x9c   : > { %1517 = vmatprep.mubr.msk.bf16.mxu0 %vm653_vm5, %v599_v18 }
  0x9d   : > { %v526_v19 = vpop.permute.xlu1 %525 }
  0x9e   : > { %v584_v21 = vsel %vm578_vm4, %v1777_v4, %v526_v19  ;;  %v532_v24 = vpop.permute.xlu0 %531 }
  0x9f   : > { %v601_v22 = vsel %vm595_vm3, %v584_v21, %v567_v11  ;;  %v590_v25 = vsel %vm578_vm4, %v1773_v2, %v532_v24 }
  0xa0   : > { %1518 = vmatmul.mubr.msk.bf16.vlgmr.msra.gmra.mxu0 %vm653_vm5, %v601_v22  ;;  %v607_v14 = vsel %vm595_vm3, %v590_v25, %v573_v10  ;;  %v1995_v10 = vstv %s1058_s7 }
  0xa1   : > { %1552 = vmatpush3.bf16.msra.mxu0 %v920_v44  ;;  %v528_v26 = vpop.permute.xlu1 %527  ;;  %1525 = vmatprep.mubr.msk.bf16.mxu1 %vm653_vm5, %v607_v14 }
  0xa2   : > { %v534_v27 = vpop.permute.xlu0 %533  ;;  %v586_v37 = vsel %vm578_vm4, %v1817_v36, %v528_v26 }
  0xa3   : > { %v592_v29 = vsel %vm578_vm4, %v1766_v0, %v534_v27 }
  0xa4   : > { %v609_v4 = vsel %vm595_vm3, %v592_v29, %v575_v12 }
  0xa5   : > { %1526 = vmatmul.mubr.msk.bf16.vlgmr.msra.gmra.mxu1 %vm653_vm5, %v609_v4  ;;  %v530_v20 = vpop.permute.xlu1 %529 }
  0xa6   : > { %v536_v30 = vpop.permute.xlu0 %535  ;;  %1534 = vmatpush3.bf16.msra.mxu1 %v1885_v40  ;;  %v588_v35 = vsel %vm578_vm4, %v1830_v41, %v530_v20 }
  0xa7   : > { %v594_v2 = vsel %vm578_vm4, %v1792_v16, %v536_v30 }
  0xa8   : > { %v611_v31 = vsel %vm595_vm3, %v594_v2, %v577_v13 }
  0xa9   : > { %1529 = vmatprep.mubr.msk.bf16.mxu1 %vm653_vm5, %v611_v31  ;;  %v571_v34 = vpop.permute.xlu1 %570 }
  0xaa   : > { %v640_v33 = vpop.permute.xlu0 %639  ;;  %v605_v38 = vsel %vm595_vm3, %v588_v35, %v571_v34 }
  0xab   : > { %v644_v0 = vsel %vm595_vm3, %v642_v32, %v640_v33 }
  0xad   : > { %1530 = vmatmul.mubr.msk.bf16.gmra.mxu1 %vm653_vm5, %v644_v0  ;;  %v563_v42 = vpop.permute.xlu1 %562 }
  0xae   : > { %v569_v16 = vpop.permute.xlu0 %568 }
  0xaf   : > { %v603_v40 = vsel %vm595_vm3, %v586_v37, %v569_v16 }
  0xb0   : > { %1521 = vmatprep.mubr.msk.bf16.mxu0 %vm653_vm5, %v603_v40 }
  0xb1   : > { %1522 = vmatmul.mubr.msk.bf16.gmra.mxu0 %vm653_vm5, %v605_v38  ;;  %v904_v46 = vpop.permute.xlu1 %903 }
  0xb2   : > { %1553 = vmatprep.mubr.msk.bf16.mxu0 %vm653_vm5, %v601_v22  ;;  %v522_v44 = vpop.permute.xlu0 %521 }
  0xb3   : > { %v580_v41 = vsel %vm578_vm4, %v1867_v28, %v522_v44 }
  0xb4   : > { %v597_v45 = vsel %vm595_vm3, %v580_v41, %v563_v42 }
  0xb5   : > { %1535 = vmatprep.mubr.msk.bf16.mxu1 %vm653_vm5, %v597_v45 }
  0xb6   : > { %1536 = vmatmul.mubr.msk.bf16.vlgmr.msra.gmra.mxu1 %vm653_vm5, %v599_v18  ;;  %v899_v36 = vpop.permute.xlu0 %898 }
  0xb7   : > { %1539 = vmatprep.mubr.msk.bf16.mxu1 %vm653_vm5, %v601_v22  ;;  %v906_v28 = vsel %vm578_vm4, %v1892_v47, %v899_v36 }
  0xb8   : > { %v908_v48 = vsel %vm595_vm3, %v906_v28, %v904_v46 }
  0xb9   : > { %1554 = vmatmul.mubr.msk.bf16.vlgmr.msra.gmra.mxu0 %vm653_vm5, %v603_v40 }
  0xba   : > { %1557 = vmatprep.mubr.msk.bf16.mxu0 %vm653_vm5, %v605_v38 }
  0xbe   : > { %1540 = vmatmul.mubr.msk.bf16.gmra.mxu1 %vm653_vm5, %v603_v40 }
  0xbf   : > { %1543 = vmatprep.mubr.msk.bf16.mxu1 %vm653_vm5, %v605_v38 }
  0xc1   : > { %1558 = vmatmul.mubr.msk.bf16.gmra.mxu0 %vm653_vm5, %v607_v14 }
  0xc2   : > { %1561 = vmatprep.mubr.msk.bf16.mxu0 %vm653_vm5, %v609_v4 }
  0xc6   : > { %1544 = vmatmul.mubr.msk.bf16.gmra.mxu1 %vm653_vm5, %v607_v14 }
  0xc7   : > { %1547 = vmatprep.mubr.msk.bf16.mxu1 %vm653_vm5, %v609_v4 }
  0xc9   : > { %1562 = vmatmul.mubr.msk.bf16.gmra.mxu0 %vm653_vm5, %v611_v31 }
  0xca   : > { %1565 = vmatprep.mubr.msk.bf16.mxu0 %vm653_vm5, %v644_v0 }
  0xce   : > { %1548 = vmatmul.mubr.msk.bf16.gmra.mxu1 %vm653_vm5, %v611_v31 }
  0xd1   : > { %1566 = vmatmul.mubr.msk.bf16.gmra.mxu0 %vm653_vm5, %v908_v48 }
 0x160   : > { %v1519_v49 = vpop.f32.mrf.mxu0 }
 0x162   : > { %v708_v51 = vpop.f32.mrf.mxu0 }
 0x164   : > { %v1520_v43 = vpop.f32.mrf.mxu0 }
 0x165   : > { %v1974_v50 = vpop.f32.mrf.mxu1 }
 0x166   : > { %v711_v47 = vpop.f32.mrf.mxu0 }
 0x167   : > { %v1976_v52 = vpop.f32.mrf.mxu1 }
 0x169   : > { %v1978_v53 = vpop.f32.mrf.mxu1 }
 0x16b   : > { %v1980_v54 = vpop.f32.mrf.mxu1 }
 0x16d   : > { %v1982_v55 = vpop.f32.mrf.mxu1 }
 0x16f   : > { %v1984_v56 = vpop.f32.mrf.mxu1 }
 0x171   : > { %v1523_v57 = vpop.f32.mrf.mxu0  ;;  %v1986_v58 = vpop.f32.mrf.mxu1 }
 0x173   : > { %v724_v59 = vpop.f32.mrf.mxu0  ;;  %v1988_v60 = vpop.f32.mrf.mxu1 }
 0x175   : > { %v1524_v61 = vpop.f32.mrf.mxu0 }
 0x176   : > { %v1537_v62 = vpop.f32.mrf.mxu1 }
 0x177   : > { %v824_v63 = vadd.f32 %v1537_v62, %v1519_v49  ;;  %v727_v3 = vpop.f32.mrf.mxu0 }
 0x178   : > { %v815_v5 = vpop.f32.mrf.mxu1 }
 0x179   : > { %v816_v39 = vadd.f32 %v815_v5, %v708_v51  ;;  %v1555_v6 = vpop.f32.mrf.mxu0 }
 0x17a   : > { %v1021_v8 = vadd.f32 %v1555_v6, %v824_v63  ;;  %v1538_v9 = vpop.f32.mrf.mxu1 }
 0x17b   : > { %v827_v11 = vadd.f32 %v1538_v9, %v1520_v43  ;;  %v956_v12 = vpop.f32.mrf.mxu0 }
 0x17c   : > { %v1044_v13 = vadd.f32 %v1993_v7, %v1021_v8  ;;  %v1019_v1 = vadd.f32 %v956_v12, %v816_v39  ;;  %v818_v15 = vpop.f32.mrf.mxu1 }
 0x17d   : > { %v819_v17 = vadd.f32 %v818_v15, %v711_v47  ;;  %v1556_v18 = vpop.f32.mrf.mxu0 }
 0x17e   : > { %v1078_v19 = vmul.f32 %v1995_v10, %v1044_v13  ;;  %v1042_v21 = vadd.f32 %v1993_v7, %v1019_v1  ;;  %v1022_v22 = vadd.f32 %v1556_v18, %v827_v11  ;;  %v1541_v23 = vpop.f32.mrf.mxu1  ;;  %vm1061_vm6 = vcmp.ge.f32.partialorder %v1044_v13, 0.0 }
 0x17f   : > { %v840_v24 = vadd.f32 %v1541_v23, %v1523_v57  ;;  %v959_v25 = vpop.f32.mrf.mxu0 }
 0x180   : > { %v1076_v26 = vmul.f32 %v1995_v10, %v1042_v21  ;;  %v1045_v14 = vadd.f32 %v1993_v7, %v1022_v22  ;;  %v1020_v27 = vadd.f32 %v959_v25, %v819_v17  ;;  %v831_v29 = vpop.f32.mrf.mxu1  ;;  %v1094_v4 = vsel %vm1061_vm6, %v1044_v13, %v1078_v19 }
 0x181   : > { %v832_v20 = vadd.f32 %v831_v29, %v724_v59  ;;  %v1559_v30 = vpop.f32.mrf.mxu0  ;;  %v1474_v2 = vpack.c.bf16 %v1094_v4, %v1094_v4  ;;  %vm1059_vm8 = vcmp.ge.f32.partialorder %v1042_v21, 0.0 }
 0x182   : > { %v1079_v31 = vmul.f32 %v1995_v10, %v1045_v14  ;;  %v1043_v32 = vadd.f32 %v1993_v7, %v1020_v27  ;;  %v1025_v33 = vadd.f32 %v1559_v30, %v840_v24  ;;  %v1542_v0 = vpop.f32.mrf.mxu1  ;;  %vm1062_vm9 = vcmp.ge.f32.partialorder %v1045_v14, 0.0 }
 0x183   : > { %v843_v34 = vadd.f32 %v1542_v0, %v1524_v61  ;;  %v972_v35 = vpop.f32.mrf.mxu0  ;;  %1193 = vrot.lane.b32.xlu0 %v1474_v2, %s1687_s12  ;;  %1175 = vst.msk [vmem:[%s2004_s14 + $0x10] sm:$0xf] %vm1172_vm7, %v1474_v2  ;;  %v1092_v37 = vsel %vm1059_vm8, %v1042_v21, %v1076_v26 }
 0x184   : > { %v1077_v16 = vmul.f32 %v1995_v10, %v1043_v32  ;;  %v1048_v38 = vadd.f32 %v1993_v7, %v1025_v33  ;;  %v1023_v40 = vadd.f32 %v972_v35, %v832_v20  ;;  %v834_v42 = vpop.f32.mrf.mxu1  ;;  %v1095_v44 = vsel %vm1062_vm9, %v1045_v14, %v1079_v31 }
 0x185   : > { %v835_v41 = vadd.f32 %v834_v42, %v727_v3  ;;  %v1560_v45 = vpop.f32.mrf.mxu0  ;;  %v1475_v36 = vpack.c.bf16 %v1095_v44, %v1095_v44  ;;  %v1472_v28 = vpack.c.bf16 %v1092_v37, %v1092_v37  ;;  %vm1060_vm10 = vcmp.ge.f32.partialorder %v1043_v32, 0.0 }
 0x186   : > { %v1082_v46 = vmul.f32 %v1995_v10, %v1048_v38  ;;  %v1046_v48 = vadd.f32 %v1993_v7, %v1023_v40  ;;  %v1026_v49 = vadd.f32 %v1560_v45, %v843_v34  ;;  %v1545_v51 = vpop.f32.mrf.mxu1  ;;  %v1093_v43 = vsel %vm1060_vm10, %v1043_v32, %v1077_v16 }
 0x187   : > { %v856_v47 = vadd.f32 %v1545_v51, %v1974_v50  ;;  %v975_v57 = vpop.f32.mrf.mxu0  ;;  %1195 = vrot.lane.b32.xlu1 %v1475_v36, %s1687_s12  ;;  %1176 = vst.msk [vmem:[%s2004_s14 + $0x14] sm:$0xf] %vm1172_vm7, %v1475_v36  ;;  %1189 = vrot.lane.b32.xlu0 %v1472_v28, %s1687_s12  ;;  %1173 = vst.msk [vmem:[%s2004_s14] sm:$0xf] %vm1172_vm7, %v1472_v28  ;;  %v1473_v59 = vpack.c.bf16 %v1093_v43, %v1093_v43  ;;  %vm1065_vm11 = vcmp.ge.f32.partialorder %v1048_v38, 0.0 }
 0x188   : > { %v1080_v61 = vmul.f32 %v1995_v10, %v1046_v48  ;;  %v1049_v62 = vadd.f32 %v1993_v7, %v1026_v49  ;;  %v1024_v63 = vadd.f32 %v975_v57, %v835_v41  ;;  %v847_v3 = vpop.f32.mrf.mxu1  ;;  %v1098_v5 = vsel %vm1065_vm11, %v1048_v38, %v1082_v46 }
 0x189   : > { %v848_v50 = vadd.f32 %v847_v3, %v1976_v52  ;;  %v1563_v39 = vpop.f32.mrf.mxu0  ;;  %1174 = vst.msk [vmem:[%s2004_s14 + $0x4] sm:$0xf] %vm1172_vm7, %v1473_v59  ;;  %v1478_v6 = vpack.c.bf16 %v1098_v5, %v1098_v5  ;;  %vm1063_vm12 = vcmp.ge.f32.partialorder %v1046_v48, 0.0 }
 0x18a   : > { %v1083_v8 = vmul.f32 %v1995_v10, %v1049_v62  ;;  %v1047_v9 = vadd.f32 %v1993_v7, %v1024_v63  ;;  %v1029_v11 = vadd.f32 %v1563_v39, %v856_v47  ;;  %v1546_v12 = vpop.f32.mrf.mxu1  ;;  %vm1066_vm13 = vcmp.ge.f32.partialorder %v1049_v62, 0.0 }
 0x18b   : > { %v859_v13 = vadd.f32 %v1546_v12, %v1978_v53  ;;  %v988_v1 = vpop.f32.mrf.mxu0  ;;  %1191 = vrot.lane.b32.xlu1 %v1473_v59, %s1687_s12  ;;  %1179 = vst.msk [vmem:[%s2004_s14 + $0x30] sm:$0xf] %vm1172_vm7, %v1478_v6  ;;  %1201 = vrot.lane.b32.xlu0 %v1478_v6, %s1687_s12  ;;  %v1096_v52 = vsel %vm1063_vm12, %v1046_v48, %v1080_v61 }
 0x18c   : > { %v1081_v15 = vmul.f32 %v1995_v10, %v1047_v9  ;;  %v1052_v17 = vadd.f32 %v1993_v7, %v1029_v11  ;;  %v1027_v18 = vadd.f32 %v988_v1, %v848_v50  ;;  %v850_v19 = vpop.f32.mrf.mxu1  ;;  %v1099_v21 = vsel %vm1066_vm13, %v1049_v62, %v1083_v8 }
 0x18d   : > { %v851_v22 = vadd.f32 %v850_v19, %v1980_v54  ;;  %v1564_v53 = vpop.f32.mrf.mxu0  ;;  %v1479_v23 = vpack.c.bf16 %v1099_v21, %v1099_v21  ;;  %v1476_v24 = vpack.c.bf16 %v1096_v52, %v1096_v52  ;;  %vm1064_vm14 = vcmp.ge.f32.partialorder %v1047_v9, 0.0 }
 0x18e   : > { %v1086_v25 = vmul.f32 %v1995_v10, %v1052_v17  ;;  %v1050_v26 = vadd.f32 %v1993_v7, %v1027_v18  ;;  %v1030_v14 = vadd.f32 %v1564_v53, %v859_v13  ;;  %v1549_v27 = vpop.f32.mrf.mxu1  ;;  %v1097_v29 = vsel %vm1064_vm14, %v1047_v9, %v1081_v15 }
 0x18f   : > { %v872_v4 = vadd.f32 %v1549_v27, %v1982_v55  ;;  %v991_v20 = vpop.f32.mrf.mxu0  ;;  %1180 = vst.msk [vmem:[%s2004_s14 + $0x34] sm:$0xf] %vm1172_vm7, %v1479_v23  ;;  %1203 = vrot.lane.b32.xlu1 %v1479_v23, %s1687_s12  ;;  %1177 = vst.msk [vmem:[%s2004_s14 + $0x20] sm:$0xf] %vm1172_vm7, %v1476_v24  ;;  %1197 = vrot.lane.b32.xlu0 %v1476_v24, %s1687_s12  ;;  %v1477_v54 = vpack.c.bf16 %v1097_v29, %v1097_v29  ;;  %vm1069_vm15 = vcmp.ge.f32.partialorder %v1052_v17, 0.0 }
 0x190   : > { %v1084_v30 = vmul.f32 %v1995_v10, %v1050_v26  ;;  %v1053_v2 = vadd.f32 %v1993_v7, %v1030_v14  ;;  %v1028_v31 = vadd.f32 %v991_v20, %v851_v22  ;;  %v863_v32 = vpop.f32.mrf.mxu1  ;;  %v1102_v33 = vsel %vm1069_vm15, %v1052_v17, %v1086_v25 }
 0x191   : > { %v864_v55 = vadd.f32 %v863_v32, %v1984_v56  ;;  %v1567_v0 = vpop.f32.mrf.mxu0  ;;  %1178 = vst.msk [vmem:[%s2004_s14 + $0x24] sm:$0xf] %vm1172_vm7, %v1477_v54  ;;  %v1482_v34 = vpack.c.bf16 %v1102_v33, %v1102_v33  ;;  %vm1067_vm0 = vcmp.ge.f32.partialorder %v1050_v26, 0.0 }
 0x192   : > { %v1087_v35 = vmul.f32 %v1995_v10, %v1053_v2  ;;  %v1051_v37 = vadd.f32 %v1993_v7, %v1028_v31  ;;  %v1033_v16 = vadd.f32 %v1567_v0, %v872_v4  ;;  %v1550_v38 = vpop.f32.mrf.mxu1  ;;  %vm1070_vm1 = vcmp.ge.f32.partialorder %v1053_v2, 0.0 }
 0x193   : > { %v875_v40 = vadd.f32 %v1550_v38, %v1986_v58  ;;  %1199 = vrot.lane.b32.xlu1 %v1477_v54, %s1687_s12  ;;  %1183 = vst.msk [vmem:[%s2004_s14 + $0x50] sm:$0xf] %vm1172_vm7, %v1482_v34  ;;  %1209 = vrot.lane.b32.xlu0 %v1482_v34, %s1687_s12  ;;  %v1004_v56 = vpop.f32.mrf.mxu0  ;;  %v1100_v42 = vsel %vm1067_vm0, %v1050_v26, %v1084_v30 }
 0x194   : > { %v1085_v44 = vmul.f32 %v1995_v10, %v1051_v37  ;;  %v1056_v41 = vadd.f32 %v1993_v7, %v1033_v16  ;;  %v1031_v45 = vadd.f32 %v1004_v56, %v864_v55  ;;  %v866_v36 = vpop.f32.mrf.mxu1  ;;  %v1103_v28 = vsel %vm1070_vm1, %v1053_v2, %v1087_v35 }
 0x195   : > { %v867_v46 = vadd.f32 %v866_v36, %v1988_v60  ;;  %v1568_v58 = vpop.f32.mrf.mxu0  ;;  %v1483_v48 = vpack.c.bf16 %v1103_v28, %v1103_v28  ;;  %v1480_v49 = vpack.c.bf16 %v1100_v42, %v1100_v42  ;;  %vm1068_vm2 = vcmp.ge.f32.partialorder %v1051_v37, 0.0 }
 0x196   : > { %v1090_v51 = vmul.f32 %v1995_v10, %v1056_v41  ;;  %v1054_v43 = vadd.f32 %v1993_v7, %v1031_v45  ;;  %v1034_v47 = vadd.f32 %v1568_v58, %v875_v40  ;;  %v1101_v57 = vsel %vm1068_vm2, %v1051_v37, %v1085_v44 }
 0x197   : > { %1184 = vst.msk [vmem:[%s2004_s14 + $0x54] sm:$0xf] %vm1172_vm7, %v1483_v48  ;;  %1211 = vrot.lane.b32.xlu1 %v1483_v48, %s1687_s12  ;;  %1181 = vst.msk [vmem:[%s2004_s14 + $0x40] sm:$0xf] %vm1172_vm7, %v1480_v49  ;;  %1205 = vrot.lane.b32.xlu0 %v1480_v49, %s1687_s12  ;;  %v1007_v60 = vpop.f32.mrf.mxu0  ;;  %v1481_v59 = vpack.c.bf16 %v1101_v57, %v1101_v57  ;;  %vm1073_vm3 = vcmp.ge.f32.partialorder %v1056_v41, 0.0 }
 0x198   : > { %v1088_v61 = vmul.f32 %v1995_v10, %v1054_v43  ;;  %v1057_v62 = vadd.f32 %v1993_v7, %v1034_v47  ;;  %v1032_v63 = vadd.f32 %v1007_v60, %v867_v46  ;;  %vm1071_vm4 = vcmp.ge.f32.partialorder %v1054_v43, 0.0 }
 0x199   : > { %1182 = vst.msk [vmem:[%s2004_s14 + $0x44] sm:$0xf] %vm1172_vm7, %v1481_v59  ;;  %v1106_v3 = vsel %vm1073_vm3, %v1056_v41, %v1090_v51 }
 0x19a   : > { %v1091_v5 = vmul.f32 %v1995_v10, %v1057_v62  ;;  %v1055_v50 = vadd.f32 %v1993_v7, %v1032_v63  ;;  %v1104_v39 = vsel %vm1071_vm4, %v1054_v43, %v1088_v61  ;;  %v1486_v6 = vpack.c.bf16 %v1106_v3, %v1106_v3 }
 0x19b   : > { %1207 = vrot.lane.b32.xlu1 %v1481_v59, %s1687_s12  ;;  %v1484_v8 = vpack.c.bf16 %v1104_v39, %v1104_v39  ;;  %vm1074_vm5 = vcmp.ge.f32.partialorder %v1057_v62, 0.0 }
 0x19c   : > { %v1089_v9 = vmul.f32 %v1995_v10, %v1055_v50  ;;  %1187 = vst.msk [vmem:[%s2004_s14 + $0x70] sm:$0xf] %vm1172_vm7, %v1486_v6  ;;  %vm1072_vm6 = vcmp.ge.f32.partialorder %v1055_v50, 0.0  ;;  %v1107_v11 = vsel %vm1074_vm5, %v1057_v62, %v1091_v5 }
 0x19d   : > { %1213 = vrot.lane.b32.xlu0 %v1484_v8, %s1687_s12  ;;  %1185 = vst.msk [vmem:[%s2004_s14 + $0x60] sm:$0xf] %vm1172_vm7, %v1484_v8  ;;  %v1487_v7 = vpack.c.bf16 %v1107_v11, %v1107_v11 }
 0x19e   : > { %v1105_v12 = vsel %vm1072_vm6, %v1055_v50, %v1089_v9 }
 0x19f   : > { %v1485_v13 = vpack.c.bf16 %v1105_v12, %v1105_v12  ;;  %1188 = vst.msk [vmem:[%s2004_s14 + $0x74] sm:$0xf] %vm1172_vm7, %v1487_v7 }
 0x1a1   : > { %1217 = vrot.lane.b32.xlu0 %v1486_v6, %s1687_s12  ;;  %1215 = vrot.lane.b32.xlu1 %v1485_v13, %s1687_s12  ;;  %1186 = vst.msk [vmem:[%s2004_s14 + $0x64] sm:$0xf] %vm1172_vm7, %v1485_v13 }
 0x1a5   : > { %1219 = vrot.lane.b32.xlu1 %v1487_v7, %s1687_s12 }
 0x1f5   : > { %v1194_v10 = vpop.permute.xlu0 %1193 }
 0x1f6   : > { %1456 = vst.msk [vmem:[%s2004_s14 + $0x18] sm:$0xf] %vm1172_vm7, %v1194_v10 }
 0x1f9   : > { %v1196_v1 = vpop.permute.xlu1 %1195  ;;  %v1190_v52 = vpop.permute.xlu0 %1189 }
 0x1fa   : > { %1457 = vst.msk [vmem:[%s2004_s14 + $0x1c] sm:$0xf] %vm1172_vm7, %v1196_v1  ;;  %1454 = vst.msk [vmem:[%s2004_s14 + $0x8] sm:$0xf] %vm1172_vm7, %v1190_v52 }
 0x1fd   : > { %v1192_v15 = vpop.permute.xlu1 %1191  ;;  %v1202_v17 = vpop.permute.xlu0 %1201 }
 0x1fe   : > { %1455 = vst.msk [vmem:[%s2004_s14 + $0xc] sm:$0xf] %vm1172_vm7, %v1192_v15  ;;  %1460 = vst.msk [vmem:[%s2004_s14 + $0x38] sm:$0xf] %vm1172_vm7, %v1202_v17 }
 0x201   : > { %v1204_v18 = vpop.permute.xlu1 %1203  ;;  %v1198_v19 = vpop.permute.xlu0 %1197 }
 0x202   : > { %1461 = vst.msk [vmem:[%s2004_s14 + $0x3c] sm:$0xf] %vm1172_vm7, %v1204_v18  ;;  %1458 = vst.msk [vmem:[%s2004_s14 + $0x28] sm:$0xf] %vm1172_vm7, %v1198_v19 }
 0x205   : > { %v1200_v21 = vpop.permute.xlu1 %1199  ;;  %v1210_v22 = vpop.permute.xlu0 %1209 }
 0x206   : > { %1459 = vst.msk [vmem:[%s2004_s14 + $0x2c] sm:$0xf] %vm1172_vm7, %v1200_v21  ;;  %1464 = vst.msk [vmem:[%s2004_s14 + $0x58] sm:$0xf] %vm1172_vm7, %v1210_v22 }
 0x209   : > { %v1212_v53 = vpop.permute.xlu1 %1211  ;;  %v1206_v23 = vpop.permute.xlu0 %1205 }
 0x20a   : > { %1465 = vst.msk [vmem:[%s2004_s14 + $0x5c] sm:$0xf] %vm1172_vm7, %v1212_v53  ;;  %1462 = vst.msk [vmem:[%s2004_s14 + $0x48] sm:$0xf] %vm1172_vm7, %v1206_v23 }
 0x20d   : > { %v1208_v24 = vpop.permute.xlu1 %1207 }
 0x20e   : > { %1463 = vst.msk [vmem:[%s2004_s14 + $0x4c] sm:$0xf] %vm1172_vm7, %v1208_v24 }
 0x20f   : > { %v1214_v25 = vpop.permute.xlu0 %1213 }
 0x210   : > { %1466 = vst.msk [vmem:[%s2004_s14 + $0x68] sm:$0xf] %vm1172_vm7, %v1214_v25 }
 0x213   : > { %v1216_v26 = vpop.permute.xlu1 %1215  ;;  %v1218_v14 = vpop.permute.xlu0 %1217 }
 0x214   : > { %1467 = vst.msk [vmem:[%s2004_s14 + $0x6c] sm:$0xf] %vm1172_vm7, %v1216_v26  ;;  %1468 = vst.msk [vmem:[%s2004_s14 + $0x78] sm:$0xf] %vm1172_vm7, %v1218_v14 }
 0x217   : > { %v1220_v27 = vpop.permute.xlu1 %1219 }
 0x218   : > { %1469 = vst.msk [vmem:[%s2004_s14 + $0x7c] sm:$0xf] %vm1172_vm7, %v1220_v27 }
 0x219 PF: > { %s16_s24 = sadd.s32 1, %s1683_s24   ;;  %s2144_s20 = smov %s1675_s22 }
 0x21a   : > { %p13_p9 = scmp.ge.s32.totalorder %s16_s24, 6   ;;  %s2145_s21 = smov %s1679_s23 }
 0x21b   : > { %s2146_s22 = smov %s2149_s4  ;;  %s2147_s23 = smov %s2153_s25 }
 0x21c   :  { %15 = sbr.rel (!%p13_p9) target bundleno = 3 (0x3), region = 76 }

</bundles_post_ra>
